<compile_context>
chip_gen: v7x
topology: tpu7x:2x2x1
jax: 0.10.0
libtpu: 0.0.40
codegen_flags: <defaults>
</compile_context>

<pallas_src>
import functools

import jax
import jax.numpy as jnp
from jax import lax
from jax.experimental import pallas as pl
from jax.experimental.pallas import tpu as pltpu


def _round_up(x, m):
    return (x + m - 1) // m * m


def _tile(dim, pref):
    """(tile, padded_dim): `pref`-sized tiles when dim is large, else a single
    full-dim tile (a full-dim block is always a legal TPU block shape)."""
    if dim >= pref:
        return pref, _round_up(dim, pref)
    return dim, dim


# ----------------------------------------------------------------------------
# Pallas kernel 1: fused-K GEMM   out = act(A @ W + bias)
#   A: (tm, K) bf16 tile, W: (K, tn) bf16, bias: (1, tn) f32.
#   Grid = (M tiles, N tiles); N innermost so A is fetched once per M tile.
# ----------------------------------------------------------------------------
def _gemm_bias_act_kernel(a_ref, w_ref, b_ref, o_ref, *, apply_lrelu, slope):
    y = jnp.dot(a_ref[...], w_ref[...], preferred_element_type=jnp.float32)
    y = y + b_ref[...]
    if apply_lrelu:
        y = jnp.maximum(y, slope * y)          # LeakyReLU, one VALU op
    o_ref[...] = y.astype(o_ref.dtype)


def gemm_bias_act(a, w, bias2d, *, apply_lrelu, slope=0.1,
                  out_dtype=jnp.bfloat16, tm_pref=512, tn_pref=512):
    """a: (M, K) bf16, w: (K, N) bf16, bias2d: (1, N) f32."""
    M, K = a.shape
    K2, N = w.shape
    assert K == K2
    tm, Mp = _tile(M, tm_pref)
    tn, Np = _tile(N, tn_pref)
    if Mp != M:
        a = jnp.pad(a, ((0, Mp - M), (0, 0)))
    if Np != N:
        w = jnp.pad(w, ((0, 0), (0, Np - N)))
        bias2d = jnp.pad(bias2d, ((0, 0), (0, Np - N)))

    kernel = functools.partial(_gemm_bias_act_kernel,
                               apply_lrelu=apply_lrelu, slope=slope)
    out = pl.pallas_call(
        kernel,
        out_shape=jax.ShapeDtypeStruct((Mp, Np), out_dtype),
        grid_spec=pltpu.PrefetchScalarGridSpec(
            num_scalar_prefetch=0,
            grid=(Mp // tm, Np // tn),          # N innermost -> A reused over j
            in_specs=[
                pl.BlockSpec((tm, K), lambda i, j: (i, 0)),
                pl.BlockSpec((K, tn), lambda i, j: (0, j)),
                pl.BlockSpec((1, tn), lambda i, j: (0, j)),
            ],
            out_specs=pl.BlockSpec((tm, tn), lambda i, j: (i, j)),
        ),
        compiler_params=pltpu.CompilerParams(
            dimension_semantics=("parallel", "parallel"),
            vmem_limit_bytes=32 * 1024 * 1024,
        ),
    )(a, w, bias2d)
    return out[:M, :N]


# ----------------------------------------------------------------------------
# Pallas kernel 2: conv1 GEMM + bias + LeakyReLU, fused with the res_conv
# per-tap channel projection (1024 -> 3) so the 1024-wide activation is
# produced and consumed in VMEM (never re-read from HBM).
# ----------------------------------------------------------------------------
def _conv1_res_kernel(a_ref, w1_ref, b1_ref, wr_ref, o_ref, s_ref, *, slope):
    y = jnp.dot(a_ref[...], w1_ref[...], preferred_element_type=jnp.float32)
    y = y + b1_ref[...]
    y = jnp.maximum(y, slope * y)
    yb = y.astype(o_ref.dtype)
    o_ref[...] = yb                            # (tm, 1024) lane-dense bf16 store
    s_ref[...] = jnp.dot(yb, wr_ref[...],      # (tm, 3) per-tap projections
                         preferred_element_type=jnp.float32)


def conv1_res_gemm(a, w1, b1_2d, wr, *, slope=0.1, tm_pref=512):
    """a: (M, K) bf16; w1: (K, 1024) bf16; b1_2d: (1, 1024) f32;
    wr: (1024, 3) bf16.  Returns (act (M, 1024) bf16, proj (M, 3) f32)."""
    M, K = a.shape
    _, N = w1.shape
    S = wr.shape[1]
    tm, Mp = _tile(M, tm_pref)
    if Mp != M:
        a = jnp.pad(a, ((0, Mp - M), (0, 0)))

    o, s = pl.pallas_call(
        functools.partial(_conv1_res_kernel, slope=slope),
        out_shape=(jax.ShapeDtypeStruct((Mp, N), jnp.bfloat16),
                   jax.ShapeDtypeStruct((Mp, S), jnp.float32)),
        grid_spec=pltpu.PrefetchScalarGridSpec(
            num_scalar_prefetch=0,
            grid=(Mp // tm,),                  # single lane-dense N block
            in_specs=[
                pl.BlockSpec((tm, K), lambda i: (i, 0)),
                pl.BlockSpec((K, N), lambda i: (0, 0)),
                pl.BlockSpec((1, N), lambda i: (0, 0)),
                pl.BlockSpec((N, S), lambda i: (0, 0)),
            ],
            out_specs=[
                pl.BlockSpec((tm, N), lambda i: (i, 0)),
                pl.BlockSpec((tm, S), lambda i: (i, 0)),
            ],
        ),
        compiler_params=pltpu.CompilerParams(
            dimension_semantics=("parallel",),
            vmem_limit_bytes=48 * 1024 * 1024,
        ),
    )(a, w1, b1_2d, wr)
    return o[:M], s[:M]


# ----------------------------------------------------------------------------
# Parameter preparation (done once): fold (Cout, Cin, Kh, 1) conv weights to
# (Kh*Cin, Cout) bf16 matrices (K zero-padded to a multiple of 8), bias to
# (1, Cout) f32.
# ----------------------------------------------------------------------------
def prepare_conv_params(w, b):
    # TODO(synk): apply weight_norm g * v/||v|| here for trained checkpoints.
    Cout, Cin, Kh, kw = w.shape
    assert kw == 1
    K = Kh * Cin
    Kp = _round_up(K, 8)
    wf = jnp.transpose(w[..., 0], (2, 1, 0)).reshape(K, Cout)   # (Kh,Cin,Cout)->(K,Cout)
    if Kp != K:
        wf = jnp.pad(wf, ((0, Kp - K), (0, 0)))
    return dict(w=wf.astype(jnp.bfloat16),
                b=b.astype(jnp.float32).reshape(1, Cout),
                kh=Kh, cin=Cin, kp=Kp)


def prepare_res_params(w, b):
    # w: (1, Cin, 3, 1) -> per-tap projection matrix (Cin, 3).
    wr = w[0, :, :, 0].astype(jnp.bfloat16)
    return dict(w=wr, b=b.astype(jnp.float32)[0])


def prepare_params(raw):
    return {
        "conv_blocks": [prepare_conv_params(w, b) for (w, b) in raw["conv_blocks"]],
        "conv1": prepare_conv_params(*raw["conv1"]),
        "res_conv": prepare_res_params(*raw["res_conv"]),
    }


# ----------------------------------------------------------------------------
# Conv wrappers on channels-last folded activations (G, H, C), G = B*period
# ----------------------------------------------------------------------------
def _fold_taps(x, Kh, stride, pad, Kp):
    """x: (G, H, Cin) -> ((G*H_out, Kp) tap-folded matrix, H_out).
    Column layout is [kh=0 channels, kh=1 channels, ...] to match the folded
    weight; the zero columns K..Kp match the zero-padded weight rows."""
    G, H, Cin = x.shape
    H_out = (H + 2 * pad - Kh) // stride + 1
    x_pad = jnp.pad(x, ((0, 0), (pad, pad), (0, 0))) if pad else x
    hi = (H_out - 1) * stride + 1
    taps = [lax.slice_in_dim(x_pad, kh, kh + hi, stride=stride, axis=1)
            for kh in range(Kh)]
    a = jnp.concatenate(taps, axis=-1)                    # (G, H_out, Kh*Cin)
    K = Kh * Cin
    if Kp != K:
        a = jnp.pad(a, ((0, 0), (0, 0), (0, Kp - K)))
    return a.reshape(G * H_out, Kp), H_out


def conv_kx1(xg, p, *, stride, pad, apply_lrelu=True, out_dtype=jnp.bfloat16):
    """Conv2d with kernel (Kh, 1) on channels-last folded input (G, H, Cin)."""
    G, H, Cin = xg.shape
    assert Cin == p["cin"]
    a, H_out = _fold_taps(xg, p["kh"], stride, pad, p["kp"])
    out = gemm_bias_act(a, p["w"], p["b"], apply_lrelu=apply_lrelu,
                        out_dtype=out_dtype)
    Cout = p["w"].shape[1]
    return out.reshape(G, H_out, Cout)


# ----------------------------------------------------------------------------
# Layout helpers + SubMultiPeriodDiscriminator forward
# ----------------------------------------------------------------------------
def make1d_to2d_folded(x, period):
    """(B, T) -> channels-last folded (B*period, H, 1); mirrors make1d_to2d."""
    B, T = x.shape
    if T % period != 0:
        n_pad = period - T % period
        x = jnp.pad(x, ((0, 0), (0, n_pad)), mode="reflect")
        T = T + n_pad
    H = T // period
    x = x.reshape(B, H, period).transpose(0, 2, 1)        # (B, W, H)
    return x.reshape(B * period, H, 1)


def folded_to_nwhc(x, B, W):
    """(G, H, C) -> (B, W, H, C) channels-last feat (pure reshape, no copy)."""
    G, H, C = x.shape
    return x.reshape(B, W, H, C)


def feat_to_nchw(f):
    """(B, W, H, C) channels-last feat -> NCHW (only where downstream needs it)."""
    return jnp.transpose(f, (0, 3, 2, 1))


def sub_mpd_forward(x, params, *, period, stride):
    """Returns (out (B, 1, H*period) f32, feats list of channels-last (B, W, H, C))."""
    B = x.shape[0]
    feats = []
    xg = make1d_to2d_folded(x, period).astype(jnp.bfloat16)

    for p in params["conv_blocks"]:
        xg = conv_kx1(xg, p, stride=stride, pad=2, apply_lrelu=True)
        feats.append(folded_to_nwhc(xg, B, period))       # bf16, channels-last

    # conv1 + res_conv projection fused in one Pallas kernel.
    p1, pr = params["conv1"], params["res_conv"]
    G = xg.shape[0]
    a, H1 = _fold_taps(xg, p1["kh"], 1, 2, p1["kp"])
    o, s = conv1_res_gemm(a, p1["w"], p1["b"], pr["w"])
    feats.append(folded_to_nwhc(o.reshape(G, H1, o.shape[-1]), B, period))

    # res_conv finishing step: 3-tap shift-add + bias ('same' padding, Kh=3)
    # on the tiny (G, H1, 3) per-tap projections.
    s = s.reshape(G, H1, 3)
    s_pad = jnp.pad(s, ((0, 0), (1, 1), (0, 0)))
    out_g = (pr["b"] + s_pad[:, 0:H1, 0] + s_pad[:, 1:H1 + 1, 1]
             + s_pad[:, 2:H1 + 2, 2])                     # (G, H1) f32
    feats.append(out_g.reshape(B, period, H1, 1))         # channels-last

    out_nchw = out_g.reshape(B, period, H1, 1).transpose(0, 3, 2, 1)  # (B,1,H1,W)
    return out_nchw.reshape(B, 1, H1 * period), feats


# ----------------------------------------------------------------------------
# Pure-JAX f32 reference (lax.conv, NCHW) for correctness checking
# ----------------------------------------------------------------------------
def _ref_conv(x, w, b, stride_h, pad, apply_lrelu):
    y = lax.conv_general_dilated(
        x, w, window_strides=(stride_h, 1),
        padding=((pad, pad), (0, 0)),
        dimension_numbers=("NCHW", "OIHW", "NCHW"))
    y = y + b[None, :, None, None]
    if apply_lrelu:
        y = jnp.where(y > 0, y, 0.1 * y)
    return y


def _ref_make1d_to2d(x, period):
    if x.shape[-1] % period != 0:
        n_pad = period - x.shape[-1] % period
        x = jnp.pad(x, ((0, 0), (0, n_pad)), mode="reflect")
    return x.reshape(x.shape[0], 1, x.shape[-1] // period, period)


def ref_forward(x, params, *, period, stride):
    feats = []
    x = _ref_make1d_to2d(x, period)
    for (w, b) in params["conv_blocks"]:
        x = _ref_conv(x, w, b, stride, 2, True)
        feats.append(x)
    w, b = params["conv1"]
    x = _ref_conv(x, w, b, 1, 2, True)
    feats.append(x)
    w, b = params["res_conv"]
    x = _ref_conv(x, w, b, 1, 1, False)
    feats.append(x)
    return x.reshape(x.shape[0], x.shape[1], -1), feats


# ----------------------------------------------------------------------------
# Deterministic parameter init (synthetic; not a checkpoint load)
# ----------------------------------------------------------------------------
def init_params(key, kernel_size, channels):
    params = {"conv_blocks": []}
    n_blocks = len(channels) - 1
    keys = jax.random.split(key, 2 * (n_blocks + 2))
    ki = 0
    for i in range(n_blocks):
        w = 0.1 * jax.random.normal(
            keys[ki], (channels[i + 1], channels[i], kernel_size, 1), jnp.float32)
        b = 0.01 * jax.random.normal(keys[ki + 1], (channels[i + 1],), jnp.float32)
        params["conv_blocks"].append((w, b))
        ki += 2
    w = 0.05 * jax.random.normal(keys[ki], (1024, channels[-1], 5, 1), jnp.float32)
    b = 0.01 * jax.random.normal(keys[ki + 1], (1024,), jnp.float32)
    params["conv1"] = (w, b)
    ki += 2
    w = 0.05 * jax.random.normal(keys[ki], (1, 1024, 3, 1), jnp.float32)
    b = 0.01 * jax.random.normal(keys[ki + 1], (1,), jnp.float32)
    params["res_conv"] = (w, b)
    return params


if __name__ == "__main__":
    # Module config (small): period=4, kernel_size=5, stride=3, channels=[1, 8, 16]
    period, kernel_size, stride = 4, 5, 3
    channels = [1, 8, 16]

    key = jax.random.PRNGKey(0)
    k_par, k_x = jax.random.split(key)
    raw_params = init_params(k_par, kernel_size, channels)
    params = prepare_params(raw_params)

    # Input: (B, T) raw 1-D signal; T not divisible by period -> exercises reflect pad.
    B, T = 2, 62
    x = jax.random.normal(k_x, (B, T), jnp.float32)

    out, feats = sub_mpd_forward(x, params, period=period, stride=stride)
    out = jax.block_until_ready(out)
    feats = [jax.block_until_ready(f) for f in feats]

    # Verify against the f32 reference.  Tolerances account for bf16 operands
    # on the MXU (accumulation is f32) and bf16 inter-layer activations.
    ref_out, ref_feats = ref_forward(x, raw_params, period=period, stride=stride)
    assert out.shape == ref_out.shape, (out.shape, ref_out.shape)
    assert jnp.allclose(out, ref_out, atol=2e-2, rtol=2e-2)
    assert len(feats) == len(ref_feats)
    for f, rf in zip(feats, ref_feats):
        f_nchw = feat_to_nchw(f).astype(jnp.float32)
        assert f_nchw.shape == rf.shape, (f_nchw.shape, rf.shape)
        assert jnp.allclose(f_nchw, rf, atol=2e-2, rtol=2e-2)

    print("KERNEL_OK")
</pallas_src>

<mosaic_0001>
module attributes {stable_mosaic.version = 11 : i64} {
  func.func @_gemm_bias_act_kernel(%arg0: i32, %arg1: i32, %arg2: memref<48x8xbf16, #tpu.memory_space<vmem>>, %arg3: memref<8x8xbf16, #tpu.memory_space<vmem>>, %arg4: memref<1x8xf32, #tpu.memory_space<vmem>>, %arg5: memref<48x8xbf16, #tpu.memory_space<vmem>>) attributes {dimension_semantics = [#tpu.dimension_semantics<parallel>, #tpu.dimension_semantics<parallel>], iteration_bounds = array<i64: 1, 1>, scalar_prefetch = 0 : i64, scratch_operands = 0 : i64, tpu.core_type = #tpu.core_type<tc>, window_params = [{transform_indices = @transform_0, window_bounds = array<i64: 48, 8>}, {transform_indices = @transform_1, window_bounds = array<i64: 8, 8>}, {transform_indices = @transform_2, window_bounds = array<i64: 1, 8>}, {transform_indices = @transform_3, window_bounds = array<i64: 48, 8>}]} {
    %c0 = arith.constant 0 : index
    %c0_0 = arith.constant 0 : index
    %0 = vector.load %arg2[%c0, %c0_0] : memref<48x8xbf16, #tpu.memory_space<vmem>>, vector<48x8xbf16>
    %c0_1 = arith.constant 0 : index
    %c0_2 = arith.constant 0 : index
    %1 = vector.load %arg3[%c0_1, %c0_2] : memref<8x8xbf16, #tpu.memory_space<vmem>>, vector<8x8xbf16>
    %cst = arith.constant dense<0.000000e+00> : vector<48x8xf32>
    %2 = tpu.matmul %0, %1, %cst {dimension_numbers = #tpu.dot_dimension_numbers<[1], [0], [0], [1], [0, 0, 1, 1], [], []>} : vector<48x8xbf16>, vector<8x8xbf16>, vector<48x8xf32> -> vector<48x8xf32>
    %c0_3 = arith.constant 0 : index
    %c0_4 = arith.constant 0 : index
    %3 = vector.load %arg4[%c0_3, %c0_4] : memref<1x8xf32, #tpu.memory_space<vmem>>, vector<1x8xf32>
    %4 = vector.broadcast %3 : vector<1x8xf32> to vector<48x8xf32>
    %5 = arith.addf %2, %4 : vector<48x8xf32>
    %cst_5 = arith.constant 1.000000e-01 : f32
    %6 = vector.broadcast %cst_5 : f32 to vector<48x8xf32>
    %7 = arith.mulf %6, %5 : vector<48x8xf32>
    %8 = arith.maximumf %5, %7 : vector<48x8xf32>
    %9 = arith.truncf %8 : vector<48x8xf32> to vector<48x8xbf16>
    %c0_6 = arith.constant 0 : index
    %c0_7 = arith.constant 0 : index
    %10 = vector.load %arg5[%c0_6, %c0_7] : memref<48x8xbf16, #tpu.memory_space<vmem>>, vector<48x8xbf16>
    tpu.vector_store %arg5[%c0_6, %c0_7], %9 {strides = array<i32>} : memref<48x8xbf16, #tpu.memory_space<vmem>>, vector<48x8xbf16>,
    return
  }
  func.func @transform_0(%arg0: i32, %arg1: i32) -> (i32, i32) {
    %c0_i32 = arith.constant 0 : i32
    %c0_i32_0 = arith.constant 0 : i32
    return %arg0, %c0_i32 : i32, i32
  }
  func.func @transform_1(%arg0: i32, %arg1: i32) -> (i32, i32) {
    %c0_i32 = arith.constant 0 : i32
    %c0_i32_0 = arith.constant 0 : i32
    return %c0_i32, %arg1 : i32, i32
  }
  func.func @transform_2(%arg0: i32, %arg1: i32) -> (i32, i32) {
    %c0_i32 = arith.constant 0 : i32
    %c0_i32_0 = arith.constant 0 : i32
    return %c0_i32, %arg1 : i32, i32
  }
  func.func @transform_3(%arg0: i32, %arg1: i32) -> (i32, i32) {
    %c0_i32 = arith.constant 0 : i32
    return %arg0, %arg1 : i32, i32
  }
}

</mosaic_0001>

<bundles_post_ra>
// kernel: tpu_custom_call.1
= control target key start
LH: loop header
LB: loop body
LE: loop exit
PB: predicated region body
PF: predicated region fallthrough
CT: control target
= control target key end

     0   :  { %vm54_vm0 = vcmask 1043456   ;;  %v206_v0 = vmov 0.0   ;;  %vm207_vm1 = vmmov 0   ;;  %vm44_vm2 = vcmask 64512   ;;  %s267_s1 = inlined_call_operand.vmem [shape: bf16[8,8], index: 1, kind: input, shape index: {}]   ;;  %s268_s0 = inlined_call_operand.vmem [shape: bf16[48,8], index: 0, kind: input, shape index: {}]   ;;  %s269_s2 = inlined_call_operand.vmem [shape: f32[1,8], index: 2, kind: input, shape index: {}]   ;;  %s270_s3 = inlined_call_operand.vmem [shape: bf16[48,8], index: 3, kind: output, shape index: {}]  }
   0x1   :  { %199 = vmatprep.subr.bf16.mxu1 %v206_v0  ;;  %v21_v1 = vld [vmem:[%s267_s1] sm:$0xf]  ;;  %191 = vmatprep.mubr.msk.bf16.mxu1 %vm207_vm1, %v206_v0  ;;  %v203_v3 = vld [vmem:[%s268_s0 + $0x8] sm:$0xff]   ;;  %v205_v5 = vld [vmem:[%s268_s0 + $0x10] sm:$0xff]   ;;  %vm151_vm3 = vcmask 60416  }
   0x2   :  { %v56_v2 = vsel %vm54_vm0, %v21_v1, 0  ;;  %185 = vmatprep.subr.bf16.mxu0 %v206_v0  ;;  %187 = vmatprep.mubr.msk.bf16.mxu0 %vm207_vm1, %v206_v0  ;;  %v204_v4 = vld [vmem:[%s268_s0] sm:$0xff]  }
   0x3   :  { %200 = vmatpush3.bf16.msra.mxu1 %v56_v2  ;;  %186 = vmatpush3.bf16.msra.mxu0 %v56_v2  ;;  %v162_v6 = vld [vmem:[%s269_s2] ss:$0 sm:$0xff] }
   0x6   :  { %192 = vmatmul.mubr.msk.bf16.vlgmr.msra.gmra.mrb[0].mxu1 %vm44_vm2, %v203_v3  ;;  %188 = vmatmul.mubr.msk.bf16.vlgmr.msra.gmra.mrb[0].mxu0 %vm44_vm2, %v204_v4 }
   0x7   :  { %195 = vmatprep.mubr.msk.bf16.mxu1 %vm207_vm1, %v206_v0 }
   0xe   :  { %196 = vmatmul.mubr.msk.bf16.gmra.mrb[4].mxu1 %vm44_vm2, %v205_v5 }
  0xd9   :  { %v100_v7 = vpop.f32.mrb[0].mxu1  ;;  %v92_v8 = vpop.f32.mrb[0].mxu0 }
  0xda   :  { %v101_v9 = vadd.f32 %v162_v6, %v100_v7  ;;  %v193_v10 = vpop.f32.mrb[1].mxu1  ;;  %v93_v11 = vadd.f32 %v162_v6, %v92_v8  ;;  %v189_v12 = vpop.f32.mrb[1].mxu0 }
  0xdb   :  { %v103_v13 = vpop.f32.mrb[2].mxu1  ;;  %v95_v14 = vpop.f32.mrb[2].mxu0 }
  0xdc   :  { %v117_v15 = vmul.f32 0.1, %v101_v9  ;;  %v104_v16 = vadd.f32 %v162_v6, %v103_v13  ;;  %v194_v17 = vpop.f32.mrb[3].mxu1  ;;  %v115_v18 = vmul.f32 0.1, %v93_v11  ;;  %v96_v19 = vadd.f32 %v162_v6, %v95_v14  ;;  %v190_v20 = vpop.f32.mrb[3].mxu0 }
  0xde   :  { %v123_v21 = vmax.f32 %v101_v9, %v117_v15  ;;  %v118_v22 = vmul.f32 0.1, %v104_v16  ;;  %v121_v23 = vmax.f32 %v93_v11, %v115_v18  ;;  %v116_v24 = vmul.f32 0.1, %v96_v19 }
  0xe0   :  { %v177_v25 = vpack.c.bf16 %v123_v21, %v123_v21  ;;  %v124_v26 = vmax.f32 %v104_v16, %v118_v22  ;;  %v175_v27 = vpack.c.bf16 %v121_v23, %v121_v23  ;;  %v122_v28 = vmax.f32 %v96_v19, %v116_v24 }
  0xe1   :  { %v108_v29 = vpop.f32.mrb[4].mxu1 }
  0xe2   :  { %154 = vst.msk [vmem:[%s270_s3 + $0x8] sm:$0xf] %vm151_vm3, %v177_v25  ;;  %v178_v30 = vpack.c.bf16 %v124_v26, %v124_v26  ;;  %152 = vst.msk [vmem:[%s270_s3] sm:$0xf] %vm151_vm3, %v175_v27  ;;  %v176_v31 = vpack.c.bf16 %v122_v28, %v122_v28  ;;  %v109_v32 = vadd.f32 %v162_v6, %v108_v29  ;;  %v197_v33 = vpop.f32.mrb[5].mxu1 }
  0xe3   :  { %v111_v34 = vpop.f32.mrb[6].mxu1 }
  0xe4   :  { %155 = vst.msk [vmem:[%s270_s3 + $0xc] sm:$0xf] %vm151_vm3, %v178_v30  ;;  %153 = vst.msk [vmem:[%s270_s3 + $0x4] sm:$0xf] %vm151_vm3, %v176_v31  ;;  %v119_v35 = vmul.f32 0.1, %v109_v32  ;;  %v112_v36 = vadd.f32 %v162_v6, %v111_v34 }
  0xe5   :  { %v198_v37 = vpop.f32.mrb[7].mxu1 }
  0xe6   :  { %v125_v38 = vmax.f32 %v109_v32, %v119_v35  ;;  %v120_v39 = vmul.f32 0.1, %v112_v36 }
  0xe8   :  { %v179_v40 = vpack.c.bf16 %v125_v38, %v125_v38  ;;  %v126_v41 = vmax.f32 %v112_v36, %v120_v39 }
  0xea   :  { %156 = vst.msk [vmem:[%s270_s3 + $0x10] sm:$0xf] %vm151_vm3, %v179_v40  ;;  %v180_v42 = vpack.c.bf16 %v126_v41, %v126_v41 }
  0xec   :  { %157 = vst.msk [vmem:[%s270_s3 + $0x14] sm:$0xf] %vm151_vm3, %v180_v42 }

</bundles_post_ra>
